<compile_context>
chip_gen: v7x
topology: tpu7x:2x2x1
jax: 0.10.0
libtpu: 0.0.40
codegen_flags: <defaults>
</compile_context>

<pallas_src>
import functools

import jax
import jax.numpy as jnp
from jax.experimental import pallas as pl
from jax.experimental.pallas import tpu as pltpu


# ------------------------------ helpers ------------------------------------ #
def _round_up(x, m):
    return ((x + m - 1) // m) * m


def _vmem_bytes(tm, tk, tn):
    # double-buffered: x tile (f32) + W tile (bf16) + bias (f32, ~8 sublanes)
    # + f32 output tile.
    return 2 * (tm * tk * 4 + tk * tn * 2 + 8 * tn * 4 + tm * tn * 4)


def _vmem_limit(est):
    return int(min(48 * 2**20, max(est + 8 * 2**20, 16 * 2**20)))


# ----------------------------- Pallas kernels ------------------------------ #
def _fused_kernel(x_ref, w_ref, b_ref, o_ref):
    """One (tm, tn) output tile, full K in a single dot (no accumulator loop)."""
    x = x_ref[...].astype(jnp.bfloat16)          # cast in-kernel (x streamed f32)
    acc = jnp.dot(x, w_ref[...], preferred_element_type=jnp.float32)
    o_ref[...] = acc + b_ref[...]                # bias fused, single store


def _ktiled_kernel(x_ref, w_ref, b_ref, o_ref):
    """Fallback for very large K: accumulate into the resident f32 output tile."""
    @pl.when(pl.program_id(2) == 0)
    def _():
        o_ref[...] = jnp.broadcast_to(b_ref[...], o_ref.shape)

    o_ref[...] += jnp.dot(x_ref[...].astype(jnp.bfloat16), w_ref[...],
                          preferred_element_type=jnp.float32)


# ------------------------------ wrapper ------------------------------------ #
@functools.partial(jax.jit, static_argnames=("fl",))
def forecast_matmul(x2d, w_kt, bias, fl):
    """x2d: [M, K] f32, w_kt: [K, FL_pad] bf16, bias: [1, FL_pad] f32 -> [M, fl] f32."""
    M, K = x2d.shape
    K_w, FL_pad = w_kt.shape
    assert K_w == K and FL_pad % 128 == 0, (K_w, K, FL_pad)

    # ---- M tiling: avoid skinny LHS tiles; padded rows sliced off at the end.
    if M <= 256:
        M_pad = _round_up(M, 8)
        tm = M_pad                       # single M tile
    else:
        M_pad = _round_up(M, 256)
        tm = 256                         # >=2 M tiles when M_pad >= 512 (v7x)
    if M_pad != M:
        x2d = jnp.pad(x2d, ((0, M_pad - M), (0, 0)))

    # ---- FL tiling: FL_pad already a lane-dense multiple of 128.
    tn = next(c for c in (512, 256, 128) if FL_pad % c == 0)

    # ---- Prefer collapsing K entirely (typical TTM K fits VMEM).
    fused_budget = 28 * 1024 * 1024
    fused_cfg = None
    for tm_c in (tm, 128):
        if M_pad % tm_c:
            continue
        for tn_c in (tn, 256, 128):
            if FL_pad % tn_c:
                continue
            if _vmem_bytes(tm_c, K, tn_c) <= fused_budget:
                fused_cfg = (tm_c, tn_c)
                break
        if fused_cfg is not None:
            break

    if fused_cfg is not None:
        tm, tn = fused_cfg
        est = _vmem_bytes(tm, K, tn)
        # M is the innermost grid axis -> W block index constant across the M
        # sweep -> W DMA'd once per FL tile (resident weight).
        grid = (FL_pad // tn, M_pad // tm)
        y_p = pl.pallas_call(
            _fused_kernel,
            out_shape=jax.ShapeDtypeStruct((M_pad, FL_pad), jnp.float32),
            grid_spec=pltpu.PrefetchScalarGridSpec(
                num_scalar_prefetch=0,
                grid=grid,
                in_specs=[
                    pl.BlockSpec((tm, K), lambda j, i: (i, 0)),   # x (f32)
                    pl.BlockSpec((K, tn), lambda j, i: (0, j)),   # W (bf16, resident)
                    pl.BlockSpec((1, tn), lambda j, i: (0, j)),   # bias (f32)
                ],
                out_specs=pl.BlockSpec((tm, tn), lambda j, i: (i, j)),
            ),
            compiler_params=pltpu.CompilerParams(
                dimension_semantics=("parallel", "parallel"),
                vmem_limit_bytes=_vmem_limit(est),
            ),
        )(x2d, w_kt, bias)
    else:
        # Very large K: tile K, accumulate into the VMEM-resident f32 output
        # block, bias folded into the k==0 init.
        tk = 2048
        K_pad = _round_up(K, tk)
        x_p = jnp.pad(x2d, ((0, 0), (0, K_pad - K)))
        w_p = jnp.pad(w_kt, ((0, K_pad - K), (0, 0)))
        est = _vmem_bytes(tm, tk, tn)
        grid = (M_pad // tm, FL_pad // tn, K_pad // tk)
        y_p = pl.pallas_call(
            _ktiled_kernel,
            out_shape=jax.ShapeDtypeStruct((M_pad, FL_pad), jnp.float32),
            grid_spec=pltpu.PrefetchScalarGridSpec(
                num_scalar_prefetch=0,
                grid=grid,
                in_specs=[
                    pl.BlockSpec((tm, tk), lambda i, j, k: (i, k)),
                    pl.BlockSpec((tk, tn), lambda i, j, k: (k, j)),
                    pl.BlockSpec((1, tn), lambda i, j, k: (0, j)),
                ],
                out_specs=pl.BlockSpec((tm, tn), lambda i, j, k: (i, j)),
            ),
            compiler_params=pltpu.CompilerParams(
                dimension_semantics=("parallel", "parallel", "arbitrary"),
                vmem_limit_bytes=_vmem_limit(est),
            ),
        )(x_p, w_p, bias)

    return y_p[:M, :fl]


# ----------------------------- Module wrapper ------------------------------ #
class TTMOutputPallas:
    """JAX/Pallas equivalent of TTMOutput (inference mode: dropout = identity)."""

    def __init__(self, num_input_channels, num_output_channels,
                 num_patches, d_model, fl, key):
        self.num_patches = num_patches
        self.d_model = d_model
        self.fl = fl
        self.fl_pad = _round_up(fl, 128)
        k1, k2, k3, k4 = jax.random.split(key, 4)
        in_feat = num_patches * d_model
        # forecast_block: Linear(num_patches*d_model -> fl)  (used in forward)
        bound_f = 1.0 / jnp.sqrt(in_feat)
        self.forecast_w = jax.random.uniform(
            k1, (fl, in_feat), jnp.float32, -bound_f, bound_f)   # torch layout [out,in]
        self.forecast_b = jax.random.uniform(
            k2, (fl,), jnp.float32, -bound_f, bound_f)
        # Pre-transposed [K, fl], pre-padded along FL to a lane-dense multiple
        # of 128 and pre-cast to bf16 ONCE here (not per forward call).
        w_kt = jnp.transpose(self.forecast_w)                    # [K, fl]
        self.forecast_w_kt = jnp.pad(
            w_kt, ((0, 0), (0, self.fl_pad - fl))).astype(jnp.bfloat16)
        self.forecast_b_pad = jnp.pad(
            self.forecast_b, (0, self.fl_pad - fl)
        ).astype(jnp.float32).reshape(1, self.fl_pad)
        # channel_projection_block: defined in __init__ for parity but unused
        # in forward (matches the PyTorch module).
        bound_c = 1.0 / jnp.sqrt(num_input_channels)
        self.chan_w = jax.random.uniform(
            k3, (num_output_channels, num_input_channels), jnp.float32,
            -bound_c, bound_c)
        self.chan_b = jax.random.uniform(
            k4, (num_output_channels,), jnp.float32, -bound_c, bound_c)
        # TODO(synk): dropout omitted (inference mode identity); training-mode
        # dropout would use pltpu.prng_seed / pltpu.stateful_bernoulli in-kernel.

    def __call__(self, hidden_features):
        # hidden_features: [B, C, patches, d_model]
        B, C, P, D = hidden_features.shape
        x2d = hidden_features.reshape(B * C, P * D)   # Flatten(start_dim=-2), fold B*C
        y2d = forecast_matmul(x2d, self.forecast_w_kt, self.forecast_b_pad,
                              fl=self.fl)
        y = y2d.reshape(B, C, self.fl)                # [B, C, fl]
        # Final transpose kept in the wrapper so the kernel output stays
        # lane-dense (fl on the last dim); spec requires [B, fl, C].
        return jnp.transpose(y, (0, 2, 1))


# ------------------------------ Reference ---------------------------------- #
def reference_forward(module, hidden_features):
    B, C, P, D = hidden_features.shape
    x = hidden_features.reshape(B, C, P * D)
    y = jnp.einsum("bck,fk->bcf", x, module.forecast_w) + module.forecast_b
    return jnp.transpose(y, (0, 2, 1))


if __name__ == "__main__":
    # Small config consistent with the module.
    B = 2
    num_input_channels = 4      # c'
    num_output_channels = 3     # (unused branch, still initialized)
    num_patches = 8
    d_model = 32
    fl = 16

    key = jax.random.PRNGKey(0)
    k_param, k_data = jax.random.split(key)

    module = TTMOutputPallas(num_input_channels, num_output_channels,
                             num_patches, d_model, fl, k_param)

    hidden_features = jax.random.normal(
        k_data, (B, num_input_channels, num_patches, d_model), jnp.float32)

    out = module(hidden_features)
    out = jax.block_until_ready(out)

    assert out.shape == (B, fl, num_input_channels), out.shape

    ref = reference_forward(module, hidden_features)
    # bf16 MXU inputs with f32 accumulation: compare against the f32 reference
    # with a correspondingly relaxed tolerance (error grows with K).
    assert jnp.allclose(out, ref, atol=2e-2, rtol=2e-2), "mismatch vs reference"

    print("KERNEL_OK")
</pallas_src>

<mosaic_0001>
module attributes {stable_mosaic.version = 11 : i64} {
  func.func @_fused_kernel(%arg0: i32, %arg1: i32, %arg2: memref<8x256xf32, #tpu.memory_space<vmem>>, %arg3: memref<256x128xbf16, #tpu.memory_space<vmem>>, %arg4: memref<1x128xf32, #tpu.memory_space<vmem>>, %arg5: memref<8x128xf32, #tpu.memory_space<vmem>>) attributes {dimension_semantics = [#tpu.dimension_semantics<parallel>, #tpu.dimension_semantics<parallel>], iteration_bounds = array<i64: 1, 1>, scalar_prefetch = 0 : i64, scratch_operands = 0 : i64, tpu.core_type = #tpu.core_type<tc>, window_params = [{transform_indices = @transform_0, window_bounds = array<i64: 8, 256>}, {transform_indices = @transform_1, window_bounds = array<i64: 256, 128>}, {transform_indices = @transform_2, window_bounds = array<i64: 1, 128>}, {transform_indices = @transform_3, window_bounds = array<i64: 8, 128>}]} {
    %c0 = arith.constant 0 : index
    %c0_0 = arith.constant 0 : index
    %0 = vector.load %arg2[%c0, %c0_0] : memref<8x256xf32, #tpu.memory_space<vmem>>, vector<8x256xf32>
    %1 = arith.truncf %0 : vector<8x256xf32> to vector<8x256xbf16>
    %c0_1 = arith.constant 0 : index
    %c0_2 = arith.constant 0 : index
    %2 = vector.load %arg3[%c0_1, %c0_2] : memref<256x128xbf16, #tpu.memory_space<vmem>>, vector<256x128xbf16>
    %cst = arith.constant dense<0.000000e+00> : vector<8x128xf32>
    %3 = tpu.matmul %1, %2, %cst {dimension_numbers = #tpu.dot_dimension_numbers<[1], [0], [0], [1], [0, 0, 1, 1], [], []>} : vector<8x256xbf16>, vector<256x128xbf16>, vector<8x128xf32> -> vector<8x128xf32>
    %c0_3 = arith.constant 0 : index
    %c0_4 = arith.constant 0 : index
    %4 = vector.load %arg4[%c0_3, %c0_4] : memref<1x128xf32, #tpu.memory_space<vmem>>, vector<1x128xf32>
    %5 = vector.broadcast %4 : vector<1x128xf32> to vector<8x128xf32>
    %6 = arith.addf %3, %5 : vector<8x128xf32>
    %c0_5 = arith.constant 0 : index
    %c0_6 = arith.constant 0 : index
    %7 = vector.load %arg5[%c0_5, %c0_6] : memref<8x128xf32, #tpu.memory_space<vmem>>, vector<8x128xf32>
    tpu.vector_store %arg5[%c0_5, %c0_6], %6 {strides = array<i32>} : memref<8x128xf32, #tpu.memory_space<vmem>>, vector<8x128xf32>,
    return
  }
  func.func @transform_0(%arg0: i32, %arg1: i32) -> (i32, i32) {
    %c0_i32 = arith.constant 0 : i32
    %c0_i32_0 = arith.constant 0 : i32
    return %arg1, %c0_i32 : i32, i32
  }
  func.func @transform_1(%arg0: i32, %arg1: i32) -> (i32, i32) {
    %c0_i32 = arith.constant 0 : i32
    %c0_i32_0 = arith.constant 0 : i32
    return %c0_i32, %arg0 : i32, i32
  }
  func.func @transform_2(%arg0: i32, %arg1: i32) -> (i32, i32) {
    %c0_i32 = arith.constant 0 : i32
    %c0_i32_0 = arith.constant 0 : i32
    return %c0_i32, %arg0 : i32, i32
  }
  func.func @transform_3(%arg0: i32, %arg1: i32) -> (i32, i32) {
    %c0_i32 = arith.constant 0 : i32
    return %arg1, %arg0 : i32, i32
  }
}

</mosaic_0001>

<bundles_post_ra>
// kernel: forecast_matmul.1
= control target key start
LH: loop header
LB: loop body
LE: loop exit
PB: predicated region body
PF: predicated region fallthrough
CT: control target
= control target key end

     0   :  { %8 = vsyncpa [#allocation3], 0  ;;  %s441_s0 = inlined_call_operand.hbm [shape: f32[8,256], index: 0, kind: input, shape index: {}]   ;;  %s442_s1 = inlined_call_operand.hbm [shape: bf16[256,128], index: 1, kind: input, shape index: {}]   ;;  %s443_s2 = inlined_call_operand.vmem [shape: f32[1,128], index: 2, kind: input, shape index: {}]   ;;  %s444_s3 = inlined_call_operand.hbm [shape: f32[8,128], index: 3, kind: output, shape index: {}]  }
   0x1   :  { %9 = vsyncpa [#allocation6], 0 }
   0x2   :  { %10 = vsyncpa [#allocation4], 0  ;;  %s370_s12 = smov [#allocation2]   ;;  %s371_s14 = smov [#allocation5]  }
   0x3   :  { %s17_s13 = sshll.u32 %s370_s12, 4  ;;  %s26_s15 = sshll.u32 %s371_s14, 4  ;;  %s18_s13 = int_to_ptr.vmem [resolvable:$true] %s17_s13  ;;  %s395_s15 = int_to_ptr.vmem [resolvable:$true] %s26_s15 }
   0x4   :  { %s298_s18 = scalar_lea.hbm %s441_s0, 256 }
   0x5   :  { %p299_p0 = scmp.ne.s32.totalorder %s441_s0, %s298_s18  ;;  %p302_p1 = scmp.lt.u32.totalorder %s298_s18, %s441_s0 }
   0x7   :  { %p304_p2 = pnand %p302_p1, %p299_p0 }
   0x9   :  { %307 = shalt.err (!%p304_p2)
}
   0xa   :  { %s308_s23 = scalar_lea.vmem %s18_s13, 256  ;;  %p313_p4 = scmp.lt.s32.totalorder %s18_s13, %s18_s13 }
   0xb   :  { %p309_p3 = scmp.ne.s32.totalorder %s18_s13, %s308_s23  ;;  %p314_p5 = scmp.lt.s32.totalorder %s308_s23, %s308_s23 }
   0xd   :  { %p315_p6 = por %p314_p5, %p313_p4 }
   0xf   :  { %p316_p7 = pnand %p315_p6, %p309_p3 }
  0x11   :  { %319 = shalt.err (!%p316_p7)
}
  0x12   :  { %20 = dma.hbm_to_vmem [thread:$0]  %s441_s0, 256, %s18_s13, [#allocation3]  }
  0x13   :  { %s320_s28 = scalar_lea.hbm %s442_s1, 2048 }
  0x14   :  { %p321_p8 = scmp.ne.s32.totalorder %s442_s1, %s320_s28  ;;  %p324_p9 = scmp.lt.u32.totalorder %s320_s28, %s442_s1 }
  0x16   :  { %p326_p10 = pnand %p324_p9, %p321_p8 }
  0x18   :  { %329 = shalt.err (!%p326_p10)
}
  0x19   :  { %s330_s6 = scalar_lea.vmem %s395_s15, 2048  ;;  %p335_p12 = scmp.lt.s32.totalorder %s395_s15, %s395_s15 }
  0x1a   :  { %p331_p11 = scmp.ne.s32.totalorder %s395_s15, %s330_s6  ;;  %p336_p13 = scmp.lt.s32.totalorder %s330_s6, %s330_s6 }
  0x1c   :  { %p337_p0 = por %p336_p13, %p335_p12 }
  0x1e   :  { %p338_p1 = pnand %p337_p0, %p331_p11 }
  0x20   :  { %341 = shalt.err (!%p338_p1)
}
  0x21   :  { %s372_s0 = smov 64   ;;  %s373_s7 = smov 4  }
  0x22   :  { %32 = dma.hbm_to_vmem [thread:$0]  %s442_s1, 2048, %s395_s15, [#allocation6], %s372_s0, %s372_s0, %s373_s7  }
  0x23   :  { %364 = dma.done.wait [#allocation3], 256  }
  0x24   :  { %365 = vsyncadd [#allocation3], 4294967040 }
  0x25   :  { %366 = dma.done.wait [#allocation6], 2048  }
  0x26   :  { %367 = vsyncadd [#allocation6], 4294965248  ;;  %v282_v0 = vld [vmem:[#allocation5 + $0x40] sm:$0xff]   ;;  %v284_v2 = vld [vmem:[#allocation5 + $0x48] sm:$0xff]   ;;  %s374_s11 = smov [#allocation7]  }
  0x27   :  { %v283_v1 = vld [vmem:[#allocation5] sm:$0xff]   ;;  %255 = vmatprep.subr.bf16.mxu0 %v282_v0  ;;  %v285_v3 = vld [vmem:[#allocation5 + $0x8] sm:$0xff]   ;;  %v286_v4 = vld [vmem:[#allocation5 + $0x50] sm:$0xff]   ;;  %s228_s12 = sshll.u32 %s374_s11, 4  ;;  %s229_s12 = int_to_ptr.vmem [resolvable:$true] %s228_s12 }
  0x28   :  { %256 = vmatpush3.bf16.msra.mxu0 %v283_v1  ;;  %v287_v5 = vld [vmem:[#allocation5 + $0x10] sm:$0xff]   ;;  %v288_v6 = vld [vmem:[#allocation5 + $0x58] sm:$0xff]   ;;  %v290_v8 = vld [vmem:[#allocation5 + $0x60] sm:$0xff]   ;;  %s342_s13 = scalar_lea.vmem %s229_s12, 128  ;;  %p347_p3 = scmp.lt.s32.totalorder %s229_s12, %s229_s12 }
  0x29   :  { %257 = vmatprep.subr.bf16.mxu0 %v284_v2  ;;  %v289_v7 = vld [vmem:[#allocation5 + $0x18] sm:$0xff]   ;;  %v291_v9 = vld [vmem:[#allocation5 + $0x20] sm:$0xff]   ;;  %v292_v10 = vld [vmem:[#allocation5 + $0x68] sm:$0xff]   ;;  %p343_p2 = scmp.ne.s32.totalorder %s229_s12, %s342_s13  ;;  %p348_p4 = scmp.lt.s32.totalorder %s342_s13, %s342_s13 }
  0x2a   :  { %v43_v11 = vld [vmem:[#allocation2 + $0x8] sm:$0xff]  ;;  %v293_v13 = vld [vmem:[#allocation5 + $0x28] sm:$0xff]   ;;  %v294_v14 = vld [vmem:[#allocation5 + $0x70] sm:$0xff]  }
  0x2b   :  { %v45_v12 = vpack.c.bf16 %v43_v11, %v43_v11  ;;  %v295_v15 = vld [vmem:[#allocation5 + $0x30] sm:$0xff]   ;;  %v296_v16 = vld [vmem:[#allocation5 + $0x78] sm:$0xff]   ;;  %p349_p5 = por %p348_p4, %p347_p3 }
  0x2c   :  { %258 = vmatpush3.bf16.msra.mxu0 %v285_v3  ;;  %v297_v17 = vld [vmem:[#allocation5 + $0x38] sm:$0xff]   ;;  %v42_v18 = vld [vmem:[#allocation2] sm:$0xff] }
  0x2d   :  { %259 = vmatprep.subr.bf16.mxu0 %v286_v4  ;;  %213 = vmatprep.mubr.bf16.mxu0 %v45_v12  ;;  %v44_v19 = vpack.c.bf16 %v42_v18, %v42_v18  ;;  %v238_v21 = vld [vmem:[%s443_s2] ss:$0 sm:$0xff]  ;;  %p350_p6 = pnand %p349_p5, %p343_p2 }
  0x30   :  { %260 = vmatpush3.bf16.msra.mxu0 %v287_v5 }
  0x31   :  { %261 = vmatprep.subr.bf16.mxu0 %v288_v6 }
  0x34   :  { %262 = vmatpush3.bf16.msra.mxu0 %v289_v7 }
  0x35   :  { %263 = vmatprep.subr.bf16.mxu0 %v290_v8 }
  0x38   :  { %264 = vmatpush3.bf16.msra.mxu0 %v291_v9 }
  0x39   :  { %265 = vmatprep.subr.bf16.mxu0 %v292_v10 }
  0x3c   :  { %266 = vmatpush3.bf16.msra.mxu0 %v293_v13 }
  0x3d   :  { %267 = vmatprep.subr.bf16.mxu0 %v294_v14 }
  0x40   :  { %268 = vmatpush3.bf16.msra.mxu0 %v295_v15 }
  0x41   :  { %269 = vmatprep.subr.bf16.mxu0 %v296_v16 }
  0x44   :  { %270 = vmatpush3.bf16.msra.mxu0 %v297_v17 }
  0x47   :  { %214 = vmatmul.mubr.bf16.vlgmr.msra.gmra.mrb[0].mxu0 %v44_v19 }
 0x11a   :  { %v271_v20 = vpop.f32.mrb[0].mxu0 }
 0x11b   :  { %v272_v22 = vpop.f32.mrb[1].mxu0 }
 0x11c   :  { %v273_v23 = vadd.f32 %v272_v22, %v271_v20  ;;  %v274_v24 = vpop.f32.mrb[2].mxu0 }
 0x11d   :  { %v275_v25 = vpop.f32.mrb[3].mxu0 }
 0x11e   :  { %v216_v26 = vadd.f32 %v273_v23, %v238_v21 }
 0x120   :  { %221 = vst [vmem:[#allocation7] sm:$0xff] %v216_v26 }
 0x121   :  { %353 = shalt.err (!%p350_p6)
}
 0x122   :  { %s354_s2 = scalar_lea.hbm %s444_s3, 128 }
 0x123   :  { %p355_p7 = scmp.ne.s32.totalorder %s444_s3, %s354_s2  ;;  %p358_p8 = scmp.lt.u32.totalorder %s354_s2, %s444_s3 }
 0x125   :  { %p360_p9 = pnand %p358_p8, %p355_p7 }
 0x127   :  { %363 = shalt.err (!%p360_p9)
}
 0x128   :  { %231 = dma.vmem_to_hbm [thread:$0]  %s229_s12, 128, %s444_s3, [#allocation4]  }
 0x129   :  { %368 = dma.done.wait [#allocation4], 128  }
 0x12a   :  { %369 = vsyncadd [#allocation4], 4294967168 }
 0x12b   :  { %235 = vsyncpa [#allocation3], 1 }
 0x12c   :  { %236 = vsyncpa [#allocation6], 1 }
 0x12d   :  { %237 = vsyncpa [#allocation4], 1 }

</bundles_post_ra>
